<compile_context>
chip_gen: v7x
topology: tpu7x:2x2x1
jax: 0.10.0
libtpu: 0.0.40
codegen_flags: <defaults>
</compile_context>

<pallas_src>
import functools

import jax
import jax.numpy as jnp
from jax.experimental import pallas as pl
from jax.experimental.pallas import tpu as pltpu

BERT_DIM = 128  # stand-in for pl.bert_dim in the reference module


def _layernorm_kernel(x_ref, gamma_ref, beta_ref, o_ref, *, eps, d):
    # x_ref: (rows_tile, D) ; gamma_ref/beta_ref: (1, D) ; o_ref: (rows_tile, D)
    x = x_ref[...].astype(jnp.float32)

    # Single pass over x: sum and sum-of-squares together.
    s1 = jnp.sum(x, axis=-1, keepdims=True)
    s2 = jnp.sum(x * x, axis=-1, keepdims=True)
    mean = s1 * (1.0 / d)
    # torch.std default: unbiased estimator (Bessel's correction, divide by N-1)
    var = (s2 - d * mean * mean) * (1.0 / (d - 1))
    var = jnp.maximum(var, 0.0)  # guard tiny negative values from cancellation
    std = jnp.sqrt(var)

    # Exact reciprocal (approx=True would risk the 1e-5 tolerance) -> multiply,
    # keeping the divide off the VALU critical chain.
    inv = pl.reciprocal(std + eps, approx=False)

    gamma = gamma_ref[...].astype(jnp.float32)
    beta = beta_ref[...].astype(jnp.float32)
    y = (x - mean) * inv * gamma + beta
    o_ref[...] = y.astype(o_ref.dtype)


def _round_up(n, m):
    return ((n + m - 1) // m) * m


def _pick_rows_tile(rows, max_rows_tile):
    """Row tile: multiple of 8 (sublane for f32), large enough to amortize the
    ~0.35 us per-grid-step overhead, small enough that big inputs still have
    >= ~4 grid steps (keeps both v7x TensorCores busy and the pipeline deep)."""
    if rows <= max_rows_tile:
        return max(_round_up(rows, 8), 8)
    tile = max_rows_tile
    while tile > 256 and pl.cdiv(rows, tile) < 4:
        tile //= 2
    return tile


def layer_norm(x, a_2, b_2, eps=1e-6, max_rows_tile=1024):
    """x: (..., D) float array. a_2, b_2: (D,). Returns same shape/dtype as x."""
    orig_shape = x.shape
    d = orig_shape[-1]
    assert a_2.shape == (d,) and b_2.shape == (d,)

    rows = 1
    for s in orig_shape[:-1]:
        rows *= s
    x2 = x.reshape(rows, d)

    rows_tile = _pick_rows_tile(rows, max_rows_tile)
    # Ragged last block handled by Pallas (OOB output rows are masked) -> no jnp.pad.
    grid = (pl.cdiv(rows, rows_tile),)

    gamma = a_2.reshape(1, d)
    beta = b_2.reshape(1, d)

    # VMEM budget: double-buffered input tile + output tile (+ tiny gamma/beta).
    itemsize = jnp.dtype(x.dtype).itemsize
    needed = 4 * rows_tile * d * itemsize + 4 * d * 4 + (1 << 20)
    # Raise above v5e's 16 MiB default when needed; cap at 48 MiB (safe on v7x's
    # 64 MiB physical VMEM and well under v5e/v6e's 128 MiB).
    vmem_limit = int(min(max(2 * needed, 32 << 20), 48 << 20))

    kernel = functools.partial(_layernorm_kernel, eps=eps, d=d)

    out = pl.pallas_call(
        kernel,
        out_shape=jax.ShapeDtypeStruct((rows, d), x.dtype),
        grid_spec=pltpu.PrefetchScalarGridSpec(
            num_scalar_prefetch=0,
            grid=grid,
            in_specs=[
                pl.BlockSpec((rows_tile, d), lambda i: (i, 0)),
                pl.BlockSpec((1, d), lambda i: (0, 0)),
                pl.BlockSpec((1, d), lambda i: (0, 0)),
            ],
            out_specs=pl.BlockSpec((rows_tile, d), lambda i: (i, 0)),
        ),
        compiler_params=pltpu.CompilerParams(
            dimension_semantics=("parallel",),
            vmem_limit_bytes=vmem_limit,
        ),
    )(x2, gamma, beta)

    return out.reshape(orig_shape)


def layer_norm_ref(x, a_2, b_2, eps=1e-6):
    """Pure-JAX reference matching the PyTorch forward exactly."""
    xf = x.astype(jnp.float32)
    mean = jnp.mean(xf, axis=-1, keepdims=True)
    var = jnp.sum((xf - mean) ** 2, axis=-1, keepdims=True) / (x.shape[-1] - 1)
    std = jnp.sqrt(var)
    return (a_2 * (xf - mean) / (std + eps) + b_2).astype(x.dtype)


if __name__ == "__main__":
    key = jax.random.PRNGKey(0)
    batch, seq, hidden = 2, 8, BERT_DIM

    x = jax.random.normal(key, (batch, seq, hidden), dtype=jnp.float32)

    # Deterministic parameter init matching nn.Parameter(torch.ones/zeros(bert_dim))
    a_2 = jnp.ones((hidden,), dtype=jnp.float32)
    b_2 = jnp.zeros((hidden,), dtype=jnp.float32)

    out = layer_norm(x, a_2, b_2, eps=1e-6)
    out = jax.block_until_ready(out)

    ref = layer_norm_ref(x, a_2, b_2, eps=1e-6)
    assert out.shape == x.shape and out.dtype == x.dtype
    assert jnp.allclose(out, ref, atol=1e-5, rtol=1e-5), "mismatch vs reference"

    print("KERNEL_OK")
</pallas_src>

<mosaic_0001>
module attributes {stable_mosaic.version = 11 : i64} {
  func.func @_layernorm_kernel(%arg0: i32, %arg1: memref<16x128xf32, #tpu.memory_space<vmem>>, %arg2: memref<1x128xf32, #tpu.memory_space<vmem>>, %arg3: memref<1x128xf32, #tpu.memory_space<vmem>>, %arg4: memref<16x128xf32, #tpu.memory_space<vmem>>) attributes {dimension_semantics = [#tpu.dimension_semantics<parallel>], iteration_bounds = array<i64: 1>, scalar_prefetch = 0 : i64, scratch_operands = 0 : i64, tpu.core_type = #tpu.core_type<tc>, window_params = [{transform_indices = @transform_0, window_bounds = array<i64: 16, 128>}, {pipeline_mode = #tpu.pipeline_mode<synchronous>, transform_indices = @transform_1, window_bounds = array<i64: 1, 128>}, {pipeline_mode = #tpu.pipeline_mode<synchronous>, transform_indices = @transform_2, window_bounds = array<i64: 1, 128>}, {transform_indices = @transform_3, window_bounds = array<i64: 16, 128>}]} {
    %c0 = arith.constant 0 : index
    %c0_0 = arith.constant 0 : index
    %0 = vector.load %arg1[%c0, %c0_0] : memref<16x128xf32, #tpu.memory_space<vmem>>, vector<16x128xf32>
    %cst = arith.constant dense<0.000000e+00> : vector<16xf32>
    %1 = vector.multi_reduction <add>, %0, %cst [1] : vector<16x128xf32> to vector<16xf32>
    %2 = vector.shape_cast %1 : vector<16xf32> to vector<16x1xf32>
    %3 = arith.mulf %0, %0 : vector<16x128xf32>
    %cst_1 = arith.constant dense<0.000000e+00> : vector<16xf32>
    %4 = vector.multi_reduction <add>, %3, %cst_1 [1] : vector<16x128xf32> to vector<16xf32>
    %5 = vector.shape_cast %4 : vector<16xf32> to vector<16x1xf32>
    %cst_2 = arith.constant 7.812500e-03 : f32
    %6 = vector.broadcast %cst_2 : f32 to vector<16x1xf32>
    %7 = arith.mulf %2, %6 : vector<16x1xf32>
    %cst_3 = arith.constant 1.280000e+02 : f32
    %8 = vector.broadcast %cst_3 : f32 to vector<16x1xf32>
    %9 = arith.mulf %8, %7 : vector<16x1xf32>
    %10 = arith.mulf %9, %7 : vector<16x1xf32>
    %11 = arith.subf %5, %10 : vector<16x1xf32>
    %cst_4 = arith.constant 0.00787401571 : f32
    %12 = vector.broadcast %cst_4 : f32 to vector<16x1xf32>
    %13 = arith.mulf %11, %12 : vector<16x1xf32>
    %cst_5 = arith.constant 0.000000e+00 : f32
    %14 = vector.broadcast %cst_5 : f32 to vector<16x1xf32>
    %15 = arith.maximumf %13, %14 : vector<16x1xf32>
    %16 = math.sqrt %15 : vector<16x1xf32>
    %cst_6 = arith.constant 9.99999997E-7 : f32
    %17 = vector.broadcast %cst_6 : f32 to vector<16x1xf32>
    %18 = arith.addf %16, %17 : vector<16x1xf32>
    %19 = tpu.reciprocal %18 : vector<16x1xf32> -> vector<16x1xf32>
    %c0_7 = arith.constant 0 : index
    %c0_8 = arith.constant 0 : index
    %20 = vector.load %arg2[%c0_7, %c0_8] : memref<1x128xf32, #tpu.memory_space<vmem>>, vector<1x128xf32>
    %c0_9 = arith.constant 0 : index
    %c0_10 = arith.constant 0 : index
    %21 = vector.load %arg3[%c0_9, %c0_10] : memref<1x128xf32, #tpu.memory_space<vmem>>, vector<1x128xf32>
    %22 = vector.broadcast %7 : vector<16x1xf32> to vector<16x128xf32>
    %23 = arith.subf %0, %22 : vector<16x128xf32>
    %24 = vector.broadcast %19 : vector<16x1xf32> to vector<16x128xf32>
    %25 = arith.mulf %23, %24 : vector<16x128xf32>
    %26 = vector.broadcast %20 : vector<1x128xf32> to vector<16x128xf32>
    %27 = arith.mulf %25, %26 : vector<16x128xf32>
    %28 = vector.broadcast %21 : vector<1x128xf32> to vector<16x128xf32>
    %29 = arith.addf %27, %28 : vector<16x128xf32>
    %c0_11 = arith.constant 0 : index
    %c0_12 = arith.constant 0 : index
    %30 = vector.load %arg4[%c0_11, %c0_12] : memref<16x128xf32, #tpu.memory_space<vmem>>, vector<16x128xf32>
    tpu.vector_store %arg4[%c0_11, %c0_12], %29 {strides = array<i32>} : memref<16x128xf32, #tpu.memory_space<vmem>>, vector<16x128xf32>,
    return
  }
  func.func @transform_0(%arg0: i32) -> (i32, i32) {
    %c0_i32 = arith.constant 0 : i32
    %c0_i32_0 = arith.constant 0 : i32
    return %arg0, %c0_i32 : i32, i32
  }
  func.func @transform_1(%arg0: i32) -> (i32, i32) {
    %c0_i32 = arith.constant 0 : i32
    %c0_i32_0 = arith.constant 0 : i32
    %c0_i32_1 = arith.constant 0 : i32
    return %c0_i32, %c0_i32_0 : i32, i32
  }
  func.func @transform_2(%arg0: i32) -> (i32, i32) {
    %c0_i32 = arith.constant 0 : i32
    %c0_i32_0 = arith.constant 0 : i32
    %c0_i32_1 = arith.constant 0 : i32
    return %c0_i32, %c0_i32_0 : i32, i32
  }
  func.func @transform_3(%arg0: i32) -> (i32, i32) {
    %c0_i32 = arith.constant 0 : i32
    %c0_i32_0 = arith.constant 0 : i32
    return %arg0, %c0_i32 : i32, i32
  }
}

</mosaic_0001>

<bundles_post_ra>
// kernel: tpu_custom_call.1
= control target key start
LH: loop header
LB: loop body
LE: loop exit
PB: predicated region body
PF: predicated region fallthrough
CT: control target
= control target key end

     0   :  { %8 = vsyncpa [#allocation3], 0  ;;  %s234_s0 = inlined_call_operand.hbm [shape: f32[16,128], index: 0, kind: input, shape index: {}]   ;;  %s235_s1 = inlined_call_operand.vmem [shape: f32[1,128], index: 1, kind: input, shape index: {}]   ;;  %s236_s2 = inlined_call_operand.vmem [shape: f32[1,128], index: 2, kind: input, shape index: {}]   ;;  %s237_s3 = inlined_call_operand.hbm [shape: f32[16,128], index: 3, kind: output, shape index: {}]  }
   0x1   :  { %9 = vsyncpa [#allocation4], 0  ;;  %s174_s12 = smov [#allocation2]   ;;  %s126_s16 = scalar_lea.hbm %s234_s0, 256 }
   0x2   :  { %s15_s13 = sshll.u32 %s174_s12, 4  ;;  %p127_p0 = scmp.ne.s32.totalorder %s234_s0, %s126_s16  ;;  %s16_s13 = int_to_ptr.vmem [resolvable:$true] %s15_s13 }
   0x3   :  { %p130_p1 = scmp.lt.u32.totalorder %s126_s16, %s234_s0 }
   0x5   :  { %p132_p2 = pnand %p130_p1, %p127_p0 }
   0x7   :  { %135 = shalt.err (!%p132_p2)
}
   0x8   :  { %s136_s21 = scalar_lea.vmem %s16_s13, 256  ;;  %p141_p4 = scmp.lt.s32.totalorder %s16_s13, %s16_s13 }
   0x9   :  { %p137_p3 = scmp.ne.s32.totalorder %s16_s13, %s136_s21  ;;  %p142_p5 = scmp.lt.s32.totalorder %s136_s21, %s136_s21 }
   0xb   :  { %p143_p6 = por %p142_p5, %p141_p4 }
   0xd   :  { %p144_p7 = pnand %p143_p6, %p137_p3 }
   0xf   :  { %147 = shalt.err (!%p144_p7)
}
  0x10   :  { %s175_s22 = smov 128   ;;  %s176_s23 = smov 8  }
  0x11   :  { %21 = dma.hbm_to_vmem [thread:$0]  %s234_s0, 256, %s16_s13, [#allocation3], %s175_s22, %s175_s22, %s176_s23  }
  0x12   :  { %170 = dma.done.wait [#allocation3], 256  }
  0x13   :  { %171 = vsyncadd [#allocation3], 4294967040  ;;  %v29_v0 = vld [vmem:[#allocation2] sm:$0xff]  ;;  %v30_v2 = vld [vmem:[#allocation2 + $0x8] sm:$0xff]  ;;  %s177_s29 = smov [#allocation5]  }
  0x14   :  { %31 = vadd.xlane.f32.xlu0 %v29_v0  ;;  %v35_v1 = vmul.f32 %v29_v0, %v29_v0  ;;  %v36_v3 = vmul.f32 %v30_v2, %v30_v2  ;;  %v112_v34 = vld [vmem:[%s235_s1] ss:$0 sm:$0xff]  ;;  %s100_s30 = sshll.u32 %s177_s29, 4  ;;  %s101_s30 = int_to_ptr.vmem [resolvable:$true] %s100_s30 }
  0x15   :  { %v113_v36 = vld [vmem:[%s236_s2] ss:$0 sm:$0xff]  ;;  %s148_s4 = scalar_lea.vmem %s101_s30, 256  ;;  %p153_p9 = scmp.lt.s32.totalorder %s101_s30, %s101_s30 }
  0x16   :  { %37 = vadd.xlane.f32.xlu1 %v35_v1  ;;  %p149_p8 = scmp.ne.s32.totalorder %s101_s30, %s148_s4  ;;  %p154_p10 = scmp.lt.s32.totalorder %s148_s4, %s148_s4 }
  0x18   :  { %33 = vadd.xlane.f32.xlu0 %v30_v2  ;;  %p155_p11 = por %p154_p10, %p153_p9 }
  0x1a   :  { %39 = vadd.xlane.f32.xlu1 %v36_v3  ;;  %p156_p12 = pnand %p155_p11, %p149_p8 }
  0xa1   :  { %v32_v4 = vpop.xlane.xlu0 %31 }
  0xa2   :  { %v41_v5 = vmul.f32 0.0078125, %v32_v4 }
  0xa3   :  { %v38_v6 = vpop.xlane.xlu1 %37 }
  0xa4   :  { %v43_v7 = vmul.f32 128.0, %v41_v5  ;;  %v73_v32 = vsub.f32 %v29_v0, %v41_v5 }
  0xa5   :  { %v34_v8 = vpop.xlane.xlu0 %33 }
  0xa6   :  { %v42_v9 = vmul.f32 0.0078125, %v34_v8  ;;  %v45_v10 = vmul.f32 %v43_v7, %v41_v5 }
  0xa7   :  { %v40_v13 = vpop.xlane.xlu1 %39 }
  0xa8   :  { %v44_v11 = vmul.f32 128.0, %v42_v9  ;;  %v47_v12 = vsub.f32 %v38_v6, %v45_v10  ;;  %v74_v38 = vsub.f32 %v30_v2, %v42_v9 }
  0xaa   :  { %v49_v14 = vmul.f32 0.007874016, %v47_v12  ;;  %v46_v15 = vmul.f32 %v44_v11, %v42_v9 }
  0xac   :  { %v51_v16 = vmax.f32 %v49_v14, 0.0  ;;  %v48_v17 = vsub.f32 %v40_v13, %v46_v15 }
  0xae   :  { %118 = vrsqrt.f32 %v51_v16  ;;  %v50_v18 = vmul.f32 0.007874016, %v48_v17  ;;  %vm55_vm0 = vcmp.eq.f32.partialorder %v51_v16, inf  ;;  %v58_v22 = vand.u32 2147483648, %v51_v16 }
  0xaf   :  { %vm57_vm1 = vcmp.eq.f32.partialorder %v51_v16, 0.0 }
  0xb0   :  { %v52_v19 = vmax.f32 %v50_v18, 0.0 }
  0xb2   :  { %120 = vrsqrt.f32 %v52_v19  ;;  %vm62_vm2 = vcmp.eq.f32.partialorder %v52_v19, inf  ;;  %v65_v28 = vand.u32 2147483648, %v52_v19  ;;  %vm64_vm3 = vcmp.eq.f32.partialorder %v52_v19, 0.0 }
  0xb8   :  { %v119_v20 = vpop.eup %118 }
  0xb9   :  { %v54_v21 = vmul.f32 %v119_v20, %v51_v16 }
  0xbb   :  { %v56_v23 = vsel %vm55_vm0, %v51_v16, %v54_v21 }
  0xbc   :  { %v59_v24 = vsel %vm57_vm1, %v58_v22, %v56_v23  ;;  %v121_v25 = vpop.eup %120 }
  0xbd   :  { %v67_v26 = vadd.f32 1e-06, %v59_v24  ;;  %v61_v27 = vmul.f32 %v121_v25, %v52_v19 }
  0xbf   :  { %122 = vrcp.f32 %v67_v26  ;;  %v63_v29 = vsel %vm62_vm2, %v52_v19, %v61_v27 }
  0xc0   :  { %v66_v30 = vsel %vm64_vm3, %v65_v28, %v63_v29 }
  0xc1   :  { %v68_v31 = vadd.f32 1e-06, %v66_v30 }
  0xc3   :  { %124 = vrcp.f32 %v68_v31 }
  0xc9   :  { %v123_v33 = vpop.eup %122 }
  0xca   :  { %v75_v35 = vmul.f32 %v123_v33, %v73_v32 }
  0xcc   :  { %v83_v37 = vmul.f32 %v112_v34, %v75_v35 }
  0xcd   :  { %v125_v39 = vpop.eup %124 }
  0xce   :  { %v91_v40 = vadd.f32 %v113_v36, %v83_v37  ;;  %v76_v41 = vmul.f32 %v125_v39, %v74_v38 }
  0xd0   :  { %93 = vst [vmem:[#allocation5] sm:$0xff] %v91_v40  ;;  %v84_v42 = vmul.f32 %v112_v34, %v76_v41 }
  0xd2   :  { %v92_v43 = vadd.f32 %v113_v36, %v84_v42 }
  0xd4   :  { %94 = vst [vmem:[#allocation5 + $0x8] sm:$0xff] %v92_v43 }
  0xd5   :  { %159 = shalt.err (!%p156_p12)
}
  0xd6   :  { %s160_s5 = scalar_lea.hbm %s237_s3, 256 }
  0xd7   :  { %p161_p13 = scmp.ne.s32.totalorder %s237_s3, %s160_s5  ;;  %p164_p0 = scmp.lt.u32.totalorder %s160_s5, %s237_s3 }
  0xd9   :  { %p166_p1 = pnand %p164_p0, %p161_p13 }
  0xdb   :  { %169 = shalt.err (!%p166_p1)
}
  0xdc   :  { %106 = dma.vmem_to_hbm [thread:$0]  %s101_s30, 256, %s237_s3, [#allocation4], %s175_s22, %s175_s22, %s176_s23  }
  0xdd   :  { %172 = dma.done.wait [#allocation4], 256  }
  0xde   :  { %173 = vsyncadd [#allocation4], 4294967040 }
  0xdf   :  { %110 = vsyncpa [#allocation3], 1 }
  0xe0   :  { %111 = vsyncpa [#allocation4], 1 }

</bundles_post_ra>
